<compile_context>
chip_gen: v6e
topology: v6e:2x2x1
jax: 0.10.0
libtpu: 0.0.40
codegen_flags: <defaults>
</compile_context>

<pallas_src>
import functools
import math

import jax
import jax.numpy as jnp
from jax.experimental import pallas as pl
from jax.experimental.pallas import tpu as pltpu


def _dice_partial_kernel(pred_ref, target_ref, inter_ref, union_ref, *,
                         tile_n, m_valid, needs_mask):
    """Accumulate per-row partial sums of sigmoid(pred)*target and sigmoid(pred)+target."""
    k = pl.program_id(0)

    @pl.when(k == 0)
    def _init():
        inter_ref[...] = jnp.zeros_like(inter_ref)
        union_ref[...] = jnp.zeros_like(union_ref)

    p = jax.nn.sigmoid(pred_ref[...].astype(jnp.float32))
    t = target_ref[...].astype(jnp.float32)

    if needs_mask:
        # Only the last tile overhangs M; a couple of VPU selects are free
        # next to the HBM traffic, so apply unconditionally when needed.
        col = jax.lax.broadcasted_iota(jnp.int32, p.shape, dimension=1)
        valid = (k * tile_n + col) < m_valid
        p = jnp.where(valid, p, 0.0)
        t = jnp.where(valid, t, 0.0)

    inter_ref[...] += jnp.sum(p * t, axis=1, keepdims=True)
    union_ref[...] += jnp.sum(p + t, axis=1, keepdims=True)   # one XLU reduce


def _row_packing(batch, n):
    """Largest power-of-two G (<= 8/gcd(B,8) target) dividing n so B*G fills sublanes."""
    g = 8 // math.gcd(batch, 8)
    while g > 1 and n % g != 0:
        g //= 2
    return g


@functools.partial(jax.jit, static_argnames=("smooth", "max_block_elems"))
def dice_loss(pred, target, smooth=1e-6, max_block_elems=512 * 1024):
    """Pallas implementation of DiceLoss.forward(pred, target).

    pred, target: (B, C, H, W) arrays (NCHW, same as PyTorch). Returns scalar f32.
    """
    assert pred.shape == target.shape
    B = pred.shape[0]
    N = math.prod(pred.shape[1:])

    G = _row_packing(B, N)
    R = B * G            # rows per block (multiple of 8 whenever N allows)
    M = N // G           # lane extent

    pred2 = pred.reshape(R, M)        # contiguous reshape: no data movement
    target2 = target.reshape(R, M)

    # Lane tile: a multiple of 128 (or the full M), sized so that
    # 2 inputs x 2 pipeline buffers stay well inside every generation's
    # scoped-VMEM budget (v5e 16 MiB default, v6e/v7x 32 MiB).
    cap = max(128, (max_block_elems // R) // 128 * 128)
    if M <= cap:
        tile_n = M
        needs_mask = False
    else:
        tile_n = cap
        needs_mask = (M % tile_n) != 0
    num_tiles = pl.cdiv(M, tile_n)

    kernel = functools.partial(
        _dice_partial_kernel,
        tile_n=tile_n, m_valid=M, needs_mask=needs_mask)

    itemsize = max(pred.dtype.itemsize, target.dtype.itemsize)
    block_bytes = R * tile_n * itemsize
    vmem_limit = int(min(64 * 1024 * 1024,
                         max(32 * 1024 * 1024, 6 * block_bytes)))

    inter_rows, union_rows = pl.pallas_call(
        kernel,
        out_shape=(jax.ShapeDtypeStruct((R, 1), jnp.float32),
                   jax.ShapeDtypeStruct((R, 1), jnp.float32)),
        grid=(num_tiles,),
        in_specs=[
            pl.BlockSpec((R, tile_n), lambda k: (0, k)),
            pl.BlockSpec((R, tile_n), lambda k: (0, k)),
        ],
        out_specs=[
            pl.BlockSpec((R, 1), lambda k: (0, 0)),
            pl.BlockSpec((R, 1), lambda k: (0, 0)),
        ],
        compiler_params=pltpu.CompilerParams(
            dimension_semantics=("arbitrary",),
            vmem_limit_bytes=vmem_limit,
        ),
        cost_estimate=pl.CostEstimate(
            flops=5 * B * N,
            transcendentals=B * N,
            bytes_accessed=int(pred2.nbytes) + int(target2.nbytes) + 2 * R * 4,
        ),
    )(pred2, target2)

    # Tiny O(B*G) finish in JAX on the per-row partials.
    inter = inter_rows.reshape(B, G).sum(axis=1)
    union = union_rows.reshape(B, G).sum(axis=1)
    dice = (2.0 * inter + smooth) / (union + smooth)
    return (1.0 - jnp.mean(dice)).astype(jnp.float32)


def _reference_dice_loss(pred, target, smooth=1e-6):
    p = jax.nn.sigmoid(pred.astype(jnp.float32))
    t = target.astype(jnp.float32)
    inter = jnp.sum(p * t, axis=(1, 2, 3))
    union = jnp.sum(p, axis=(1, 2, 3)) + jnp.sum(t, axis=(1, 2, 3))
    dice = (2.0 * inter + smooth) / (union + smooth)
    return 1.0 - jnp.mean(dice)


if __name__ == "__main__":
    key = jax.random.PRNGKey(0)
    k1, k2, k3, k4 = jax.random.split(key, 4)

    # Main case: matches the PyTorch module's NCHW inputs.
    B, C, H, W = 2, 4, 16, 16
    pred = jax.random.normal(k1, (B, C, H, W), dtype=jnp.float32)
    target = (jax.random.uniform(k2, (B, C, H, W)) > 0.5).astype(jnp.float32)

    loss = dice_loss(pred, target)
    jax.block_until_ready(loss)
    ref = _reference_dice_loss(pred, target)
    assert jnp.allclose(loss, ref, atol=1e-5, rtol=1e-5), (loss, ref)

    # Exercise the multi-tile accumulator path (packed rows, small tile cap).
    loss_tiled = dice_loss(pred, target, max_block_elems=8 * 128)
    jax.block_until_ready(loss_tiled)
    assert jnp.allclose(loss_tiled, ref, atol=1e-5, rtol=1e-5), (loss_tiled, ref)

    # Exercise the ragged-tail mask + row-packing fallback (odd N) and a
    # bf16 target (binary -> exact), which halves that stream's HBM traffic.
    B2, C2, H2, W2 = 2, 3, 15, 17
    pred2 = jax.random.normal(k3, (B2, C2, H2, W2), dtype=jnp.float32)
    target2 = (jax.random.uniform(k4, (B2, C2, H2, W2)) > 0.5).astype(jnp.bfloat16)
    loss2 = dice_loss(pred2, target2, max_block_elems=2 * 128)
    jax.block_until_ready(loss2)
    ref2 = _reference_dice_loss(pred2, target2.astype(jnp.float32))
    assert jnp.allclose(loss2, ref2, atol=1e-5, rtol=1e-5), (loss2, ref2)

    print("KERNEL_OK")
</pallas_src>

<mosaic_0001>
module attributes {stable_mosaic.version = 11 : i64} {
  func.func @_dice_partial_kernel(%arg0: i32, %arg1: memref<8x256xf32, #tpu.memory_space<vmem>>, %arg2: memref<8x256xf32, #tpu.memory_space<vmem>>, %arg3: memref<8x1xf32, #tpu.memory_space<vmem>>, %arg4: memref<8x1xf32, #tpu.memory_space<vmem>>) attributes {dimension_semantics = [#tpu.dimension_semantics<arbitrary>], iteration_bounds = array<i64: 1>, scalar_prefetch = 0 : i64, scratch_operands = 0 : i64, tpu.core_type = #tpu.core_type<tc>, window_params = [{transform_indices = @transform_0, window_bounds = array<i64: 8, 256>}, {transform_indices = @transform_1, window_bounds = array<i64: 8, 256>}, {pipeline_mode = #tpu.pipeline_mode<synchronous>, transform_indices = @transform_2, window_bounds = array<i64: 8, 1>}, {pipeline_mode = #tpu.pipeline_mode<synchronous>, transform_indices = @transform_3, window_bounds = array<i64: 8, 1>}]} {
    %c0_i32 = arith.constant 0 : i32
    %0 = arith.cmpi eq, %arg0, %c0_i32 : i32
    %1 = arith.extui %0 : i1 to i32
    %c0_i32_0 = arith.constant 0 : i32
    %2 = arith.cmpi ne, %1, %c0_i32_0 : i32
    scf.if %2 {
      %cst_14 = arith.constant 0.000000e+00 : f32
      %22 = vector.broadcast %cst_14 : f32 to vector<8x1xf32>
      %c0_15 = arith.constant 0 : index
      %c0_16 = arith.constant 0 : index
      %23 = vector.load %arg3[%c0_15, %c0_16] : memref<8x1xf32, #tpu.memory_space<vmem>>, vector<8x1xf32>
      tpu.vector_store %arg3[%c0_15, %c0_16], %22 {strides = array<i32>} : memref<8x1xf32, #tpu.memory_space<vmem>>, vector<8x1xf32>,
      %cst_17 = arith.constant 0.000000e+00 : f32
      %24 = vector.broadcast %cst_17 : f32 to vector<8x1xf32>
      %c0_18 = arith.constant 0 : index
      %c0_19 = arith.constant 0 : index
      %25 = vector.load %arg4[%c0_18, %c0_19] : memref<8x1xf32, #tpu.memory_space<vmem>>, vector<8x1xf32>
      tpu.vector_store %arg4[%c0_18, %c0_19], %24 {strides = array<i32>} : memref<8x1xf32, #tpu.memory_space<vmem>>, vector<8x1xf32>,
    } else {
    }
    %c0 = arith.constant 0 : index
    %c0_1 = arith.constant 0 : index
    %3 = vector.load %arg1[%c0, %c0_1] : memref<8x256xf32, #tpu.memory_space<vmem>>, vector<8x256xf32>
    %4 = arith.negf %3 : vector<8x256xf32>
    %5 = math.exp %4 : vector<8x256xf32>
    %cst = arith.constant 1.000000e+00 : f32
    %6 = vector.broadcast %cst : f32 to vector<8x256xf32>
    %7 = arith.addf %6, %5 : vector<8x256xf32>
    %8 = arith.divf %6, %7 : vector<8x256xf32>
    %c0_2 = arith.constant 0 : index
    %c0_3 = arith.constant 0 : index
    %9 = vector.load %arg2[%c0_2, %c0_3] : memref<8x256xf32, #tpu.memory_space<vmem>>, vector<8x256xf32>
    %c0_4 = arith.constant 0 : index
    %c0_5 = arith.constant 0 : index
    %10 = vector.load %arg3[%c0_4, %c0_5] : memref<8x1xf32, #tpu.memory_space<vmem>>, vector<8x1xf32>
    %11 = arith.mulf %8, %9 : vector<8x256xf32>
    %cst_6 = arith.constant dense<0.000000e+00> : vector<8xf32>
    %12 = vector.multi_reduction <add>, %11, %cst_6 [1] : vector<8x256xf32> to vector<8xf32>
    %13 = vector.shape_cast %12 : vector<8xf32> to vector<8x1xf32>
    %14 = arith.addf %10, %13 : vector<8x1xf32>
    %c0_7 = arith.constant 0 : index
    %c0_8 = arith.constant 0 : index
    %15 = vector.load %arg3[%c0_7, %c0_8] : memref<8x1xf32, #tpu.memory_space<vmem>>, vector<8x1xf32>
    tpu.vector_store %arg3[%c0_7, %c0_8], %14 {strides = array<i32>} : memref<8x1xf32, #tpu.memory_space<vmem>>, vector<8x1xf32>,
    %c0_9 = arith.constant 0 : index
    %c0_10 = arith.constant 0 : index
    %16 = vector.load %arg4[%c0_9, %c0_10] : memref<8x1xf32, #tpu.memory_space<vmem>>, vector<8x1xf32>
    %17 = arith.addf %8, %9 : vector<8x256xf32>
    %cst_11 = arith.constant dense<0.000000e+00> : vector<8xf32>
    %18 = vector.multi_reduction <add>, %17, %cst_11 [1] : vector<8x256xf32> to vector<8xf32>
    %19 = vector.shape_cast %18 : vector<8xf32> to vector<8x1xf32>
    %20 = arith.addf %16, %19 : vector<8x1xf32>
    %c0_12 = arith.constant 0 : index
    %c0_13 = arith.constant 0 : index
    %21 = vector.load %arg4[%c0_12, %c0_13] : memref<8x1xf32, #tpu.memory_space<vmem>>, vector<8x1xf32>
    tpu.vector_store %arg4[%c0_12, %c0_13], %20 {strides = array<i32>} : memref<8x1xf32, #tpu.memory_space<vmem>>, vector<8x1xf32>,
    return
  }
  func.func @transform_0(%arg0: i32) -> (i32, i32) {
    %c0_i32 = arith.constant 0 : i32
    %c0_i32_0 = arith.constant 0 : i32
    return %c0_i32, %arg0 : i32, i32
  }
  func.func @transform_1(%arg0: i32) -> (i32, i32) {
    %c0_i32 = arith.constant 0 : i32
    %c0_i32_0 = arith.constant 0 : i32
    return %c0_i32, %arg0 : i32, i32
  }
  func.func @transform_2(%arg0: i32) -> (i32, i32) {
    %c0_i32 = arith.constant 0 : i32
    %c0_i32_0 = arith.constant 0 : i32
    %c0_i32_1 = arith.constant 0 : i32
    return %c0_i32, %c0_i32_0 : i32, i32
  }
  func.func @transform_3(%arg0: i32) -> (i32, i32) {
    %c0_i32 = arith.constant 0 : i32
    %c0_i32_0 = arith.constant 0 : i32
    %c0_i32_1 = arith.constant 0 : i32
    return %c0_i32, %c0_i32_0 : i32, i32
  }
}

</mosaic_0001>

<bundles_post_ra>
// kernel: dice_loss.1
= control target key start
LH: loop header
LB: loop body
LE: loop exit
PB: predicated region body
PF: predicated region fallthrough
CT: control target
= control target key end

     0   :  { %vm17_vm0 = vcmask 7168   ;;  %v72_v2 = vmov 0.0   ;;  %s127_s0 = inlined_call_operand.vmem [shape: f32[8,256], index: 0, kind: input, shape index: {}]   ;;  %s128_s2 = inlined_call_operand.vmem [shape: f32[8,1], index: 2, kind: output, shape index: {0}]   ;;  %s129_s1 = inlined_call_operand.vmem [shape: f32[8,256], index: 1, kind: input, shape index: {}]   ;;  %s130_s3 = inlined_call_operand.vmem [shape: f32[8,1], index: 3, kind: output, shape index: {1}]  }
   0x1   :  { %v20_v0 = vld [vmem:[%s127_s0] sm:$0xff]  ;;  %v21_v1 = vld [vmem:[%s127_s0 + $0x8] sm:$0xff]  ;;  %18 = vst.msk [vmem:[%s128_s2] sm:$0xff] %vm17_vm0, %v72_v2  ;;  %19 = vst.msk [vmem:[%s130_s3] sm:$0xff] %vm17_vm0, %v72_v2 }
   0x2   :  { %v61_v3 = vmul.f32 -1.442695, %v20_v0  ;;  %v62_v4 = vmul.f32 -1.442695, %v21_v1  ;;  %v34_v9 = vld [vmem:[%s129_s1] sm:$0xff]  ;;  %v35_v10 = vld [vmem:[%s129_s1 + $0x8] sm:$0xff] }
   0x4   :  { %64 = vpow2.f32 %v61_v3 }
   0x5   :  { %66 = vpow2.f32 %v62_v4 }
   0x8   :  { %v36_v19 = vld [vmem:[%s128_s2] sm:$0xff] }
   0x9   :  { %v45_v22 = vld [vmem:[%s130_s3] sm:$0xff] }
  0x11   :  { %v65_v5 = vpop.eup %64 }
  0x12   :  { %v67_v6 = vpop.eup %66  ;;  %v28_v7 = vadd.f32 1.0, %v65_v5 }
  0x13   :  { %v29_v8 = vadd.f32 1.0, %v67_v6 }
  0x14   :  { %68 = vrcp.f32 %v28_v7 }
  0x15   :  { %70 = vrcp.f32 %v29_v8 }
  0x21   :  { %v69_v11 = vpop.eup %68 }
  0x22   :  { %v71_v12 = vpop.eup %70  ;;  %v37_v13 = vmul.f32 %v69_v11, %v34_v9  ;;  %v46_v15 = vadd.f32 %v69_v11, %v34_v9 }
  0x23   :  { %v38_v14 = vmul.f32 %v71_v12, %v35_v10  ;;  %v47_v16 = vadd.f32 %v71_v12, %v35_v10 }
  0x25   :  { %v39_v17 = vadd.f32 %v38_v14, %v37_v13  ;;  %v48_v18 = vadd.f32 %v47_v16, %v46_v15 }
  0x27   :  { %40 = vadd.xlane.f32.xlu0 %v39_v17 }
  0x2b   :  { %49 = vadd.xlane.f32.xlu0 %v48_v18 }
  0xb0   :  { %v41_v20 = vpop.xlane.xlu0 %40 }
  0xb1   :  { %v42_v21 = vadd.f32 %v41_v20, %v36_v19 }
  0xb3   :  { %44 = vst.msk [vmem:[%s128_s2] sm:$0xff] %vm17_vm0, %v42_v21 }
  0xb4   :  { %v50_v23 = vpop.xlane.xlu0 %49 }
  0xb5   :  { %v51_v24 = vadd.f32 %v50_v23, %v45_v22 }
  0xb7   :  { %52 = vst.msk [vmem:[%s130_s3] sm:$0xff] %vm17_vm0, %v51_v24 }

</bundles_post_ra>
